<compile_context>
chip_gen: v6e
topology: v6e:2x2x1
jax: 0.10.0
libtpu: 0.0.40
codegen_flags: <defaults>
</compile_context>

<pallas_src>
import jax
import jax.numpy as jnp
from jax.experimental import pallas as pl
from jax.experimental.pallas import tpu as pltpu


# --------------------------------------------------------------------------- kernel
def resblock_kernel(x_ref, w1_ref, w2_ref, b1_ref, b2_ref, o_ref):
    # x_ref : (nb, H, WC)    f32 activations, lane axis = W*C (lane dense)
    # w*_ref: (3*WC, WC)     bf16 fused banded conv weights (BN scale folded in)
    # b*_ref: (1, WC)        f32 folded BN bias, tiled along W
    # o_ref : (nb, H, WC)    bf16 output
    nb, H, WC = x_ref.shape
    M = nb * H

    x_f32 = x_ref[...]                                 # keep f32 for the residual path
    xb = x_f32.astype(jnp.bfloat16)                    # MXU operand
    zrows = jnp.zeros((nb, 1, WC), jnp.bfloat16)

    def fused_lhs(a):
        # (nb, H, WC) bf16 -> (nb*H, 3*WC) bf16: 1-row zero halo in H (padding along W is
        # baked into the band matrices), then the three dy-shifted slices concatenated along
        # the lane axis (128-aligned, no masked loads/stores).
        ap = jnp.concatenate([zrows, a, zrows], axis=1)                    # (nb, H+2, WC)
        lhs = jnp.concatenate([ap[:, 0:H], ap[:, 1:H + 1], ap[:, 2:H + 2]], axis=-1)
        return lhs.reshape(M, 3 * WC)

    # ---- conv1 + bn1 (folded) + ReLU : ONE K=3*WC MXU matmul ----------------
    acc1 = jnp.dot(fused_lhs(xb), w1_ref[...], preferred_element_type=jnp.float32)
    out1 = jnp.maximum(acc1 + b1_ref[...], 0.0)                            # (M, WC) f32

    # ---- conv2 + bn2 (folded) : ONE K=3*WC MXU matmul -----------------------
    lhs2 = fused_lhs(out1.astype(jnp.bfloat16).reshape(nb, H, WC))
    acc2 = jnp.dot(lhs2, w2_ref[...], preferred_element_type=jnp.float32)

    # ---- identity (f32) + residual ReLU, store bf16 -------------------------
    res = jnp.maximum(x_f32.reshape(M, WC) + acc2 + b2_ref[...], 0.0)
    o_ref[...] = res.reshape(nb, H, WC).astype(jnp.bfloat16)


# ----------------------------------------------------------------- host-side prep
def _fold_bn_into_weight(w_pt, gamma, beta, mean, var, eps):
    """PyTorch (Cout,Cin,kh,kw) -> (kh,kw,Cin,Cout) with BN scale folded; bias (Cout,)."""
    inv = gamma / jnp.sqrt(var + eps)
    w = jnp.transpose(w_pt, (2, 3, 1, 0)).astype(jnp.float32) * inv     # scale Cout
    b = beta - mean * inv
    return w, b


def _band_weights(w, W):
    """(3,3,Cin,Cout) -> (3, W*Cin, W*Cout) banded matrices.

    band[dy, wi*Cin+ci, wo*Cout+co] = w[dy, wi-wo+1, ci, co]  if 0 <= wi-wo+1 <= 2
    (zero otherwise), i.e. zero padding along W is baked in.
    """
    _, _, Cin, Cout = w.shape
    wi = jnp.arange(W)[:, None]
    wo = jnp.arange(W)[None, :]
    dx = wi - wo + 1                                       # (W, W)
    valid = (dx >= 0) & (dx <= 2)
    dx_c = jnp.clip(dx, 0, 2)
    g = w[:, dx_c, :, :]                                   # (3, W, W, Cin, Cout)
    g = jnp.where(valid[None, :, :, None, None], g, 0.0)
    g = jnp.transpose(g, (0, 1, 3, 2, 4))                  # (3, wi, Cin, wo, Cout)
    return g.reshape(3, W * Cin, W * Cout)


def resblock_forward_hwc(x_hwc, W, C, w1, w2, bn1, bn2, eps=1e-5):
    """x_hwc: (N, H, W*C) f32, lane index = w*C + c.  Returns (N, H, W*C) bf16."""
    N, H, WC = x_hwc.shape
    assert WC == W * C and WC % 128 == 0, "lane axis W*C must be a multiple of 128"
    assert w1.shape[0] == w1.shape[1] == C, "identity shortcut requires Cin == Cout"

    w1f, b1 = _fold_bn_into_weight(w1, *bn1, eps)
    w2f, b2 = _fold_bn_into_weight(w2, *bn2, eps)
    # Fused-K weight slabs: stack the three dy band matrices along K -> (3*WC, WC).
    w1b = _band_weights(w1f, W).reshape(3 * WC, WC).astype(jnp.bfloat16)
    w2b = _band_weights(w2f, W).reshape(3 * WC, WC).astype(jnp.bfloat16)
    b1l = jnp.tile(b1, W)[None, :].astype(jnp.float32)     # (1, WC), lane = w*C + c
    b2l = jnp.tile(b2, W)[None, :].astype(jnp.float32)

    # Collapse batch to <=2 grid steps; keep 2 parallel steps (even N) for v7x's two TCs.
    steps = 2 if (N % 2 == 0 and N >= 2) else 1
    nb = N // steps

    return pl.pallas_call(
        resblock_kernel,
        out_shape=jax.ShapeDtypeStruct((N, H, WC), jnp.bfloat16),
        grid_spec=pltpu.PrefetchScalarGridSpec(
            num_scalar_prefetch=0,
            grid=(steps,),
            in_specs=[
                pl.BlockSpec((nb, H, WC), lambda n: (n, 0, 0)),
                pl.BlockSpec((3 * WC, WC), lambda n: (0, 0)),
                pl.BlockSpec((3 * WC, WC), lambda n: (0, 0)),
                pl.BlockSpec((1, WC), lambda n: (0, 0)),
                pl.BlockSpec((1, WC), lambda n: (0, 0)),
            ],
            out_specs=pl.BlockSpec((nb, H, WC), lambda n: (n, 0, 0)),
        ),
        compiler_params=pltpu.CompilerParams(dimension_semantics=("parallel",)),
    )(x_hwc.astype(jnp.float32), w1b, w2b, b1l, b2l)


def resblock_forward(x_nchw, w1, w2, bn1, bn2, eps=1e-5):
    """NCHW convenience wrapper.  x_nchw: (N, C, H, W) f32; w1/w2: (Cout, Cin, 3, 3);
       bn* = (gamma, beta, running_mean, running_var), each (C,).  Returns NCHW bf16."""
    N, C, H, W = x_nchw.shape
    x_hwc = jnp.transpose(x_nchw, (0, 2, 3, 1)).reshape(N, H, W * C)
    out = resblock_forward_hwc(x_hwc, W, C, w1, w2, bn1, bn2, eps)        # bf16
    # Output transpose runs on bf16 (half the bytes of the old f32 transpose).
    return jnp.transpose(out.reshape(N, H, W, C), (0, 3, 1, 2))


# ----------------------------------------------------------------------- references
def _conv(x, w):
    return jax.lax.conv_general_dilated(
        x, w, window_strides=(1, 1), padding=((1, 1), (1, 1)),
        dimension_numbers=("NCHW", "OIHW", "NCHW"),
        precision=jax.lax.Precision.HIGHEST)


def resblock_ref(x, w1, w2, bn1, bn2, eps=1e-5):
    """Plain-JAX f32 reference with the original module (inference-BN) semantics."""
    def bn(x, p):
        g, b, m, v = p
        inv = g / jnp.sqrt(v + eps)
        return x * inv[None, :, None, None] + (b - m * inv)[None, :, None, None]
    out = jax.nn.relu(bn(_conv(x, w1), bn1))
    return jax.nn.relu(x + bn(_conv(out, w2), bn2))


def resblock_ref_bf16(x, w1, w2, bn1, bn2, eps=1e-5):
    """Reference mirroring the kernel's bf16 quantization points (tight check)."""
    def fold(w, p):
        g, b, m, v = p
        inv = g / jnp.sqrt(v + eps)
        return w * inv[:, None, None, None], b - m * inv
    q = lambda a: a.astype(jnp.bfloat16).astype(jnp.float32)
    w1f, b1 = fold(w1, bn1)
    w2f, b2 = fold(w2, bn2)
    out = jax.nn.relu(_conv(q(x), q(w1f)) + b1[None, :, None, None])      # f32 epilogue
    out = jax.nn.relu(x + _conv(q(out), q(w2f)) + b2[None, :, None, None])  # f32 residual
    return q(out)                                                          # bf16 store


# ------------------------------------------------------------------------------ main
if __name__ == "__main__":
    key = jax.random.PRNGKey(0)
    ks = jax.random.split(key, 12)

    N, C, H, W = 2, 8, 16, 16          # in_channel == out_channel (downsample=None); W*C = 128
    x = jax.random.normal(ks[0], (N, C, H, W), jnp.float32)

    w1 = jax.random.normal(ks[1], (C, C, 3, 3), jnp.float32) * 0.1
    w2 = jax.random.normal(ks[2], (C, C, 3, 3), jnp.float32) * 0.1

    bn1 = (jax.random.uniform(ks[3], (C,), jnp.float32, 0.5, 1.5),    # gamma
           jax.random.normal(ks[4], (C,), jnp.float32) * 0.1,          # beta
           jax.random.normal(ks[5], (C,), jnp.float32) * 0.1,          # running_mean
           jax.random.uniform(ks[6], (C,), jnp.float32, 0.5, 1.5))     # running_var
    bn2 = (jax.random.uniform(ks[7], (C,), jnp.float32, 0.5, 1.5),
           jax.random.normal(ks[8], (C,), jnp.float32) * 0.1,
           jax.random.normal(ks[9], (C,), jnp.float32) * 0.1,
           jax.random.uniform(ks[10], (C,), jnp.float32, 0.5, 1.5))

    out = resblock_forward(x, w1, w2, bn1, bn2)
    jax.block_until_ready(out)
    assert out.shape == (N, C, H, W)
    out_f = out.astype(jnp.float32)

    ref_q = resblock_ref_bf16(x, w1, w2, bn1, bn2)    # kernel-numerics-matched
    ref_f = resblock_ref(x, w1, w2, bn1, bn2)         # true f32 module semantics
    err_q = float(jnp.abs(out_f - ref_q).max())
    err_f = float(jnp.abs(out_f - ref_f).max())
    assert err_q < 4e-2, f"mismatch vs bf16-matched reference: {err_q}"
    assert err_f < 1e-1, f"mismatch vs f32 module reference: {err_f}"
    print("KERNEL_OK")
</pallas_src>

<mosaic_0001>
module attributes {stable_mosaic.version = 11 : i64} {
  func.func @resblock_kernel(%arg0: i32, %arg1: memref<1x16x128xf32, #tpu.memory_space<vmem>>, %arg2: memref<384x128xbf16, #tpu.memory_space<vmem>>, %arg3: memref<384x128xbf16, #tpu.memory_space<vmem>>, %arg4: memref<1x128xf32, #tpu.memory_space<vmem>>, %arg5: memref<1x128xf32, #tpu.memory_space<vmem>>, %arg6: memref<1x16x128xbf16, #tpu.memory_space<vmem>>) attributes {dimension_semantics = [#tpu.dimension_semantics<parallel>], iteration_bounds = array<i64: 2>, scalar_prefetch = 0 : i64, scratch_operands = 0 : i64, tpu.core_type = #tpu.core_type<tc>, window_params = [{transform_indices = @transform_0, window_bounds = array<i64: 1, 16, 128>}, {pipeline_mode = #tpu.pipeline_mode<synchronous>, transform_indices = @transform_1, window_bounds = array<i64: 384, 128>}, {pipeline_mode = #tpu.pipeline_mode<synchronous>, transform_indices = @transform_2, window_bounds = array<i64: 384, 128>}, {pipeline_mode = #tpu.pipeline_mode<synchronous>, transform_indices = @transform_3, window_bounds = array<i64: 1, 128>}, {pipeline_mode = #tpu.pipeline_mode<synchronous>, transform_indices = @transform_4, window_bounds = array<i64: 1, 128>}, {transform_indices = @transform_5, window_bounds = array<i64: 1, 16, 128>}]} {
    %c0 = arith.constant 0 : index
    %c0_0 = arith.constant 0 : index
    %c0_1 = arith.constant 0 : index
    %0 = vector.load %arg1[%c0, %c0_0, %c0_1] : memref<1x16x128xf32, #tpu.memory_space<vmem>>, vector<1x16x128xf32>
    %1 = arith.truncf %0 : vector<1x16x128xf32> to vector<1x16x128xbf16>
    %cst = arith.constant 0.000000e+00 : bf16
    %2 = vector.broadcast %cst : bf16 to vector<1x1x128xbf16>
    %3 = tpu.concatenate %2, %1, %2 in 1 : vector<1x1x128xbf16>, vector<1x16x128xbf16>, vector<1x1x128xbf16> -> vector<1x18x128xbf16>
    %4 = vector.extract_strided_slice %3 {offsets = [0, 0, 0], sizes = [1, 16, 128], strides = [1, 1, 1]} : vector<1x18x128xbf16> to vector<1x16x128xbf16>
    %5 = vector.extract_strided_slice %3 {offsets = [0, 1, 0], sizes = [1, 16, 128], strides = [1, 1, 1]} : vector<1x18x128xbf16> to vector<1x16x128xbf16>
    %6 = vector.extract_strided_slice %3 {offsets = [0, 2, 0], sizes = [1, 16, 128], strides = [1, 1, 1]} : vector<1x18x128xbf16> to vector<1x16x128xbf16>
    %7 = tpu.concatenate %4, %5, %6 in 2 : vector<1x16x128xbf16>, vector<1x16x128xbf16>, vector<1x16x128xbf16> -> vector<1x16x384xbf16>
    %8 = vector.shape_cast %7 : vector<1x16x384xbf16> to vector<16x384xbf16>
    %c0_2 = arith.constant 0 : index
    %c0_3 = arith.constant 0 : index
    %9 = vector.load %arg2[%c0_2, %c0_3] : memref<384x128xbf16, #tpu.memory_space<vmem>>, vector<384x128xbf16>
    %cst_4 = arith.constant dense<0.000000e+00> : vector<16x128xf32>
    %10 = tpu.matmul %8, %9, %cst_4 {dimension_numbers = #tpu.dot_dimension_numbers<[1], [0], [0], [1], [0, 0, 1, 1], [], []>} : vector<16x384xbf16>, vector<384x128xbf16>, vector<16x128xf32> -> vector<16x128xf32>
    %c0_5 = arith.constant 0 : index
    %c0_6 = arith.constant 0 : index
    %11 = vector.load %arg4[%c0_5, %c0_6] : memref<1x128xf32, #tpu.memory_space<vmem>>, vector<1x128xf32>
    %12 = vector.broadcast %11 : vector<1x128xf32> to vector<16x128xf32>
    %13 = arith.addf %10, %12 : vector<16x128xf32>
    %cst_7 = arith.constant 0.000000e+00 : f32
    %14 = vector.broadcast %cst_7 : f32 to vector<16x128xf32>
    %15 = arith.maximumf %13, %14 : vector<16x128xf32>
    %16 = arith.truncf %15 : vector<16x128xf32> to vector<16x128xbf16>
    %17 = vector.shape_cast %16 : vector<16x128xbf16> to vector<1x16x128xbf16>
    %18 = tpu.concatenate %2, %17, %2 in 1 : vector<1x1x128xbf16>, vector<1x16x128xbf16>, vector<1x1x128xbf16> -> vector<1x18x128xbf16>
    %19 = vector.extract_strided_slice %18 {offsets = [0, 0, 0], sizes = [1, 16, 128], strides = [1, 1, 1]} : vector<1x18x128xbf16> to vector<1x16x128xbf16>
    %20 = vector.extract_strided_slice %18 {offsets = [0, 1, 0], sizes = [1, 16, 128], strides = [1, 1, 1]} : vector<1x18x128xbf16> to vector<1x16x128xbf16>
    %21 = vector.extract_strided_slice %18 {offsets = [0, 2, 0], sizes = [1, 16, 128], strides = [1, 1, 1]} : vector<1x18x128xbf16> to vector<1x16x128xbf16>
    %22 = tpu.concatenate %19, %20, %21 in 2 : vector<1x16x128xbf16>, vector<1x16x128xbf16>, vector<1x16x128xbf16> -> vector<1x16x384xbf16>
    %23 = vector.shape_cast %22 : vector<1x16x384xbf16> to vector<16x384xbf16>
    %c0_8 = arith.constant 0 : index
    %c0_9 = arith.constant 0 : index
    %24 = vector.load %arg3[%c0_8, %c0_9] : memref<384x128xbf16, #tpu.memory_space<vmem>>, vector<384x128xbf16>
    %cst_10 = arith.constant dense<0.000000e+00> : vector<16x128xf32>
    %25 = tpu.matmul %23, %24, %cst_10 {dimension_numbers = #tpu.dot_dimension_numbers<[1], [0], [0], [1], [0, 0, 1, 1], [], []>} : vector<16x384xbf16>, vector<384x128xbf16>, vector<16x128xf32> -> vector<16x128xf32>
    %26 = vector.shape_cast %0 : vector<1x16x128xf32> to vector<16x128xf32>
    %27 = arith.addf %26, %25 : vector<16x128xf32>
    %c0_11 = arith.constant 0 : index
    %c0_12 = arith.constant 0 : index
    %28 = vector.load %arg5[%c0_11, %c0_12] : memref<1x128xf32, #tpu.memory_space<vmem>>, vector<1x128xf32>
    %29 = vector.broadcast %28 : vector<1x128xf32> to vector<16x128xf32>
    %30 = arith.addf %27, %29 : vector<16x128xf32>
    %cst_13 = arith.constant 0.000000e+00 : f32
    %31 = vector.broadcast %cst_13 : f32 to vector<16x128xf32>
    %32 = arith.maximumf %30, %31 : vector<16x128xf32>
    %33 = vector.shape_cast %32 : vector<16x128xf32> to vector<1x16x128xf32>
    %34 = arith.truncf %33 : vector<1x16x128xf32> to vector<1x16x128xbf16>
    %c0_14 = arith.constant 0 : index
    %c0_15 = arith.constant 0 : index
    %c0_16 = arith.constant 0 : index
    %35 = vector.load %arg6[%c0_14, %c0_15, %c0_16] : memref<1x16x128xbf16, #tpu.memory_space<vmem>>, vector<1x16x128xbf16>
    tpu.vector_store %arg6[%c0_14, %c0_15, %c0_16], %34 {strides = array<i32>} : memref<1x16x128xbf16, #tpu.memory_space<vmem>>, vector<1x16x128xbf16>,
    return
  }
  func.func @transform_0(%arg0: i32) -> (i32, i32, i32) {
    %c0_i32 = arith.constant 0 : i32
    %c0_i32_0 = arith.constant 0 : i32
    %c0_i32_1 = arith.constant 0 : i32
    return %arg0, %c0_i32, %c0_i32_0 : i32, i32, i32
  }
  func.func @transform_1(%arg0: i32) -> (i32, i32) {
    %c0_i32 = arith.constant 0 : i32
    %c0_i32_0 = arith.constant 0 : i32
    %c0_i32_1 = arith.constant 0 : i32
    return %c0_i32, %c0_i32_0 : i32, i32
  }
  func.func @transform_2(%arg0: i32) -> (i32, i32) {
    %c0_i32 = arith.constant 0 : i32
    %c0_i32_0 = arith.constant 0 : i32
    %c0_i32_1 = arith.constant 0 : i32
    return %c0_i32, %c0_i32_0 : i32, i32
  }
  func.func @transform_3(%arg0: i32) -> (i32, i32) {
    %c0_i32 = arith.constant 0 : i32
    %c0_i32_0 = arith.constant 0 : i32
    %c0_i32_1 = arith.constant 0 : i32
    return %c0_i32, %c0_i32_0 : i32, i32
  }
  func.func @transform_4(%arg0: i32) -> (i32, i32) {
    %c0_i32 = arith.constant 0 : i32
    %c0_i32_0 = arith.constant 0 : i32
    %c0_i32_1 = arith.constant 0 : i32
    return %c0_i32, %c0_i32_0 : i32, i32
  }
  func.func @transform_5(%arg0: i32) -> (i32, i32, i32) {
    %c0_i32 = arith.constant 0 : i32
    %c0_i32_0 = arith.constant 0 : i32
    %c0_i32_1 = arith.constant 0 : i32
    return %arg0, %c0_i32, %c0_i32_0 : i32, i32, i32
  }
}

</mosaic_0001>

<bundles_post_ra>
// kernel: tpu_custom_call.1
= control target key start
LH: loop header
LB: loop body
LE: loop exit
PB: predicated region body
PF: predicated region fallthrough
CT: control target
= control target key end

     0   :  { %10 = vsyncpa [#allocation3], 0  ;;  %s1767_s0 = inlined_call_operand.hbm [shape: f32[2,16,128], index: 0, kind: input, shape index: {}]   ;;  %s1768_s1 = inlined_call_operand.hbm [shape: bf16[384,128], index: 1, kind: input, shape index: {}]   ;;  %s1769_s2 = inlined_call_operand.hbm [shape: bf16[384,128], index: 2, kind: input, shape index: {}]   ;;  %s1770_s3 = inlined_call_operand.vmem [shape: f32[1,128], index: 3, kind: input, shape index: {}]   ;;  %s1771_s4 = inlined_call_operand.vmem [shape: f32[1,128], index: 4, kind: input, shape index: {}]   ;;  %s1772_s5 = inlined_call_operand.hbm [shape: bf16[2,16,128], index: 5, kind: output, shape index: {}]  }
   0x1   :  { %12 = vsyncpa [#allocation3 + $0x1], 0 }
   0x2   :  { %13 = vsyncpa [#allocation6], 0 }
   0x3   :  { %14 = vsyncpa [#allocation4], 0 }
   0x4   :  { %16 = vsyncpa [#allocation4 + $0x1], 0  ;;  %s1524_s18 = smov 0   ;;  %s1526_s19 = smov 0  }
   0x5   :  { %s1528_s20 = smov 0   ;;  %s1530_s21 = smov 0  }
   0x6 LB: > { %s1545_s22 = sadd.s32 4294967295, %s1480_s21   ;;  %s1028_s23 = sadd.s32 4294967294, %s1480_s21   ;;  %s1480_s21 = sphi %s1530_s21, %s1796_s21   ;;  %s1476_s20 = sphi %s1528_s20, %s1795_s20   ;;  %s1472_s19 = sphi %s1526_s19, %s1794_s19   ;;  %s1468_s18 = sphi %s1524_s18, %s1793_s18  }
   0x7   : > { %p42_p0 = scmp.ne.s32.totalorder %s1472_s19, %s1468_s18  ;;  %p1773_p1 = scmp.eq.s32.totalorder %s1545_s22, 0 }
   0x8   : > { %p156_p3 = scmp.eq.s32.totalorder %s1028_s23, 1  ;;  %p1029_p5 = scmp.ge.s32.totalorder %s1480_s21, 1 }
   0x9   : > { %p1554_p4 = por %p1773_p1, %p42_p0  ;;  %p163_p7 = scmp.lt.s32.totalorder %s1480_s21, 3 }
   0xa   : > { %p1559_p6 = por %p156_p3, %p42_p0  ;;  %s1482_s27 = smov [#allocation5]  }
   0xb   : > { %s1777_s24 = scalar_select %p1554_p4, 1, 0 }
   0xc   : > { %s1778_s25 = scalar_select %p1559_p6, 1, 0 }
   0xd   : > { %p1564_p8 = pnand %p1029_p5, %p163_p7  ;;  %s175_s28 = sshll.u32 %s1482_s27, 4  ;;  %s176_s28 = int_to_ptr.vmem [resolvable:$true] %s175_s28 }
   0xe   : > { %s1483_s30 = smov [#allocation7]   ;;  %s1343_s7 = scalar_lea.vmem %s176_s28, 3072 }
   0xf   : > { %s1779_s26 = scalar_select %p1564_p8, 1, 0 }
  0x10   : > { %p1221_p9 = pneg %p1564_p8  ;;  %s188_s6 = sshll.u32 %s1483_s30, 4  ;;  %s189_s6 = int_to_ptr.vmem [resolvable:$true] %s188_s6 }
  0x11   : > { %p1344_p13 = scmp.ne.s32.totalorder %s176_s28, %s1343_s7  ;;  %p1351_p5 = scmp.lt.s32.totalorder %s176_s28, %s176_s28 }
  0x12   : > { %p1573_p11 = pnand %p1221_p9, %p1773_p1  ;;  %p1352_p7 = scmp.lt.s32.totalorder %s1343_s7, %s1343_s7 }
  0x14   : > { %p1334_p12 = pneg %p1573_p11  ;;  %p1353_p10 = por %p1352_p7, %p1351_p5 }
  0x16   : > { %p1346_p0 = pnand %p1344_p13, %p1334_p12 }
  0x18   : > { %p1347_p3 = pneg %p1346_p0 }
  0x1a   : > { %p1354_p9 = pnand %p1353_p10, %p1347_p3 }
  0x1c   : > { %1357 = shalt.err (!%p1354_p9)
}
  0x1d   : > { %s1484_s8 = smov 64   ;;  %s1485_s9 = smov 4  }
  0x1e   : > { %1224 = dma.hbm_to_vmem [thread:$0]  (!%p1573_p11), %s1768_s1, 3072, %s176_s28, [#allocation6], %s1484_s8, %s1484_s8, %s1485_s9  }
  0x1f   : > { %s1369_s12 = scalar_lea.vmem %s189_s6, 3072  ;;  %p1377_p2 = scmp.lt.s32.totalorder %s189_s6, %s189_s6 }
  0x20   : > { %p1370_p1 = scmp.ne.s32.totalorder %s189_s6, %s1369_s12  ;;  %p1378_p6 = scmp.lt.s32.totalorder %s1369_s12, %s1369_s12 }
  0x22   : > { %p1372_p13 = pnand %p1370_p1, %p1334_p12  ;;  %p1379_p5 = por %p1378_p6, %p1377_p2 }
  0x24   : > { %p1373_p0 = pneg %p1372_p13 }
  0x26   : > { %p1380_p10 = pnand %p1379_p5, %p1373_p0 }
  0x28   : > { %1383 = shalt.err (!%p1380_p10)
}
  0x29   : > { %1227 = dma.hbm_to_vmem [thread:$0]  (!%p1573_p11), %s1769_s2, 3072, %s189_s6, [#allocation6], %s1484_s8, %s1484_s8, %s1485_s9  }
  0x2a   : > { %s1596_s15 = sadd.s32 1, %s1480_s21   ;;  %s29_s16 = sadd.s32 1, %s1476_s20 }
  0x2b   : > { %s26_s17 = ssub.s32 %s1480_s21, %s1596_s15  ;;  %p36_p1 = scmp.ne.s32.totalorder %s1476_s20, %s1472_s19 }
  0x2c   : > { %p27_p2 = scmp.eq.s32.totalorder %s26_s17, 0  ;;  %p37_p6 = scmp.eq.s32.totalorder %s1480_s21, 0 }
  0x2d   : > { %p1781_p12 = scmp.eq.s32.totalorder %s1545_s22, 1  ;;  %p1238_p7 = scmp.lt.s32.totalorder %s1480_s21, 2 }
  0x2e   : > { %s1612_s27 = scalar_select %p27_p2, %s1476_s20, %s29_s16  }
  0x2f   : > { %p1606_p3 = por %p1781_p12, %p36_p1  ;;  %p38_p9 = por %p37_p6, %p36_p1 }
  0x30   : > { %s208_s28 = sand.u32 1, %s1476_s20   ;;  %s1098_s30 = sshll.u32 %s1480_s21, 8 }
  0x31   : > { %s1782_s23 = scalar_select %p1606_p3, 1, 0 }
  0x32   : > { %s1033_s29 = sshll.u32 %s208_s28, 4  ;;  %s1619_s8 = scalar_lea.hbm %s1767_s0, %s1098_s30 }
  0x33   : > { %s212_s9 = scalar_lea.vmem [#allocation2], %s1033_s29  ;;  %p1623_p11 = pnand %p1238_p7, %p38_p9 }
  0x34   : > { %s219_s10 = sshll.u32 %s212_s9, 4  ;;  %s1627_s12 = scalar_lea.sflag [#allocation3], %s208_s28  ;;  %s1621_s10 = int_to_ptr.vmem [resolvable:$true] %s219_s10 }
  0x35   : > { %s1384_s13 = scalar_lea.hbm %s1619_s8, 256  ;;  %p1386_p0 = pneg %p1623_p11 }
  0x36   : > { %p1385_p13 = scmp.ne.s32.totalorder %s1619_s8, %s1384_s13  ;;  %s1389_s17 = scalar_lea.hbm %s1767_s0, 512 }
  0x37   : > { %p1390_p1 = scmp.lt.s32.totalorder %s1619_s8, %s1767_s0  ;;  %p1391_p2 = scmp.lt.s32.totalorder %s1389_s17, %s1384_s13 }
  0x38   : > { %p1387_p5 = pnand %p1386_p0, %p1385_p13 }
  0x39   : > { %p1392_p6 = por %p1391_p2, %p1390_p1 }
  0x3a   : > { %p1388_p10 = pneg %p1387_p5 }
  0x3c   : > { %p1393_p12 = pnand %p1392_p6, %p1388_p10 }
  0x3e   : > { %1396 = shalt.err (!%p1393_p12)
}
  0x3f   : > { %s1397_s28 = scalar_lea.vmem %s1621_s10, 256  ;;  %s1486_s6 = smov [#allocation2]  }
  0x40   : > { %p1398_p7 = scmp.ne.s32.totalorder %s1621_s10, %s1397_s28  ;;  %s1402_s7 = sshll.u32 %s1486_s6, 4  ;;  %s1403_s7 = int_to_ptr.vmem [resolvable:$false] %s1402_s7 }
  0x41   : > { %s1404_s9 = scalar_lea.vmem %s1403_s7, 512  ;;  %p1405_p5 = scmp.lt.s32.totalorder %s1621_s10, %s1403_s7 }
  0x42   : > { %p1400_p9 = pnand %p1398_p7, %p1386_p0  ;;  %p1406_p3 = scmp.lt.s32.totalorder %s1404_s9, %s1397_s28 }
  0x44   : > { %p1401_p13 = pneg %p1400_p9  ;;  %p1407_p4 = por %p1406_p3, %p1405_p5 }
  0x46   : > { %p1408_p8 = pnand %p1407_p4, %p1401_p13 }
  0x48   : > { %1411 = shalt.err (!%p1408_p8)
}
  0x49   : > { %s1487_s13 = smov 128   ;;  %s1488_s14 = smov 8  }
  0x4a   : > { %1231 = dma.hbm_to_vmem [thread:$0]  (!%p1623_p11), %s1619_s8, 256, %s1621_s10, %s1627_s12, %s1487_s13, %s1487_s13, %s1488_s14  }
  0x4b   : > { %p1784_p0 = scmp.ne.s32.totalorder %s1779_s26, 0 }
  0x4c   : > { %s1651_s16 = sand.u32 (!%p1784_p0), 1, %s1472_s19   ;;  %p1785_p4 = scmp.ne.s32.totalorder (!%p1784_p0), %s1777_s24, 0 }
  0x4d   : > { %231 = sbr.rel (%p1784_p0) target bundleno = 569 (0x239), region = 40  ;;  %s1037_s17 = sshll.u32 (!%p1784_p0), %s1651_s16, 4 }
  0x4e   : > { %s234_s29 = scalar_lea.sflag (!%p1784_p0), [#allocation3], %s1651_s16  ;;  %s1655_s30 = scalar_lea.vmem (!%p1784_p0), [#allocation2], %s1037_s17 }
  0x52   : > { %1455 = dma.done.wait (%p1785_p4), %s234_s29, 256  }
  0x53   : > { %1457 = vsyncadd (%p1785_p4), %s234_s29, 4294967040  ;;  %p1786_p8 = scmp.eq.s32.totalorder %s1545_s22, 0 }
  0x55   : > { %1459 = dma.done.wait (%p1786_p8), [#allocation6], 6144   ;;  %p1787_p3 = pmov %p1786_p8 }
  0x56   : > { %v1489_v0 = vmov 0.0   ;;  %vm1490_vm0 = vmmov 0   ;;  %v1284_v1 = vld [vmem:[#allocation5 + $0x78] sm:$0xff]   ;;  %v1287_v4 = vld [vmem:[#allocation5 + $0x70] sm:$0xff]   ;;  %v1290_v7 = vld [vmem:[#allocation5 + $0x68] sm:$0xff]   ;;  %vm285_vm2 = vcmask 1040384  }
  0x57   : > { %1461 = vsyncadd (%p1787_p3), [#allocation6], 4294961152  ;;  %1169 = vmatprep.subr.bf16.mxu1 %v1489_v0  ;;  %1185 = vmatprep.mubr.msk.bf16.mxu1 %vm1490_vm0, %v1489_v0  ;;  %v1285_v2 = vld [vmem:[#allocation5 + $0x38] sm:$0xff]   ;;  %v1288_v5 = vld [vmem:[#allocation5 + $0x30] sm:$0xff]   ;;  %vm286_vm1 = vsmask.f32 256 }
  0x58   : > { %1107 = vmatprep.subr.bf16.mxu0 %v1284_v1  ;;  %v1286_v3 = vld [vmem:[#allocation5 + $0xb8] sm:$0xff]   ;;  %v1289_v6 = vld [vmem:[#allocation5 + $0xb0] sm:$0xff]   ;;  %v1291_v8 = vld [vmem:[#allocation5 + $0x28] sm:$0xff]   ;;  %vm290_vm4 = vsmask.f32 7424  ;;  %vm306_vm5 = vcmask 1046528  }
  0x59   : > { %1108 = vmatpush3.bf16.msra.mxu0 %v1285_v2  ;;  %1170 = vmatpush3.bf16.msra.mxu1 %v1286_v3  ;;  %v1292_v9 = vld [vmem:[#allocation5 + $0xa8] sm:$0xff]   ;;  %v1293_v10 = vld [vmem:[#allocation5 + $0x60] sm:$0xff]   ;;  %v1296_v13 = vld [vmem:[#allocation5 + $0x58] sm:$0xff]   ;;  %s1040_s8 = sshll.u32 %s1651_s16, 3  ;;  %s1101_s12 = sshll.u32 %s1545_s22, 7 }
  0x5a   : > { %1109 = vmatprep.subr.bf16.mxu0 %v1287_v4  ;;  %1171 = vmatprep.subr.bf16.mxu1 %v1489_v0  ;;  %v1294_v11 = vld [vmem:[#allocation5 + $0x20] sm:$0xff]   ;;  %v1297_v14 = vld [vmem:[#allocation5 + $0x18] sm:$0xff]   ;;  %v1299_v16 = vld [vmem:[#allocation5 + $0x50] sm:$0xff]   ;;  %s271_s28 = scalar_lea.vmem [#allocation8], %s1040_s8  ;;  %s1722_s13 = scalar_lea.hbm %s1772_s5, %s1101_s12 }
  0x5b   : > { %v1295_v12 = vld [vmem:[#allocation5 + $0xa0] sm:$0xff]   ;;  %v1298_v15 = vld [vmem:[#allocation5 + $0x98] sm:$0xff]   ;;  %v1300_v17 = vld [vmem:[#allocation5 + $0x10] sm:$0xff]   ;;  %s936_s6 = sshll.u32 %s271_s28, 4  ;;  %s923_s14 = scalar_lea.sflag [#allocation4], %s1651_s16  ;;  %s1724_s6 = int_to_ptr.vmem [resolvable:$true] %s936_s6 }
  0x5c   : > { %v1301_v18 = vld [vmem:[#allocation5 + $0x90] sm:$0xff]   ;;  %v1302_v19 = vld [vmem:[#allocation5 + $0x48] sm:$0xff]   ;;  %v1305_v22 = vld [vmem:[#allocation5 + $0x40] sm:$0xff]   ;;  %s1412_s17 = scalar_lea.vmem %s1724_s6, 128  ;;  %p1790_p10 = scmp.ne.s32.totalorder %s1782_s23, 0 }
  0x5d   : > { %1110 = vmatpush3.bf16.msra.mxu0 %v1288_v5  ;;  %1172 = vmatpush3.bf16.msra.mxu1 %v1289_v6  ;;  %v1303_v20 = vld [vmem:[#allocation5 + $0x8] sm:$0xff]   ;;  %v1674_v23 = vld [vmem:[%s1655_s30] sm:$0xff]  ;;  %vm1683_vm3 = vmand %vm285_vm2, %vm286_vm1  ;;  %p1413_p11 = scmp.ne.s32.totalorder %s1724_s6, %s1412_s17  ;;  %s1491_s22 = smov [#allocation8]  }
  0x5e   : > { %1111 = vmatprep.subr.bf16.mxu0 %v1290_v7  ;;  %1173 = vmatprep.subr.bf16.mxu1 %v1489_v0  ;;  %v1304_v21 = vld [vmem:[#allocation5 + $0x88] sm:$0xff]   ;;  %v1306_v25 = vld [vmem:[#allocation5] sm:$0xff]   ;;  %v1308_v40 = vld [vmem:[#allocation7 + $0xb8] sm:$0xff]   ;;  %s1416_s29 = sshll.u32 %s1491_s22, 4  ;;  %s1417_s29 = int_to_ptr.vmem [resolvable:$false] %s1416_s29 }
  0x5f   : > { %v1677_v24 = vld [vmem:[%s1655_s30 + $0x8] sm:$0xff]  ;;  %v1307_v27 = vld [vmem:[#allocation5 + $0x80] sm:$0xff]   ;;  %v1310_v47 = vld [vmem:[#allocation7 + $0xb0] sm:$0xff]   ;;  %p1414_p1 = pnand %p1413_p11, %p1790_p10  ;;  %s1418_s30 = scalar_lea.vmem %s1417_s29, 256 }
  0x60   : > { %v275_v26 = vpack.c.bf16 %v1677_v24, %v1674_v23  ;;  %v1309_v46 = vld [vmem:[#allocation7 + $0x78] sm:$0xff]   ;;  %v1312_v49 = vld [vmem:[#allocation7 + $0x70] sm:$0xff]   ;;  %v1313_v50 = vld [vmem:[#allocation7 + $0xa8] sm:$0xff]   ;;  %p1419_p6 = scmp.lt.s32.totalorder %s1724_s6, %s1417_s29  ;;  %p1420_p12 = scmp.lt.s32.totalorder %s1418_s30, %s1412_s17 }
  0x61   : > { %1112 = vmatpush3.bf16.msra.mxu0 %v1291_v8  ;;  %1174 = vmatpush3.bf16.msra.mxu1 %v1292_v9  ;;  %v1311_v48 = vld [vmem:[#allocation7 + $0x38] sm:$0xff]   ;;  %v1314_v51 = vld [vmem:[#allocation7 + $0x30] sm:$0xff]   ;;  %v1315_v52 = vld [vmem:[#allocation7 + $0x68] sm:$0xff]   ;;  %p1415_p2 = pneg %p1414_p1 }
  0x62   : > { %1113 = vmatprep.subr.bf16.mxu0 %v1293_v10  ;;  %1175 = vmatprep.subr.bf16.mxu1 %v1489_v0  ;;  %v277_v28 = vshrl.u32 %v275_v26, 16  ;;  %v280_v29 = vshll.u32 %v275_v26, 16  ;;  %v1316_v53 = vld [vmem:[#allocation7 + $0xa0] sm:$0xff]   ;;  %v1317_v54 = vld [vmem:[#allocation7 + $0x28] sm:$0xff]   ;;  %v1319_v56 = vld [vmem:[#allocation7 + $0x98] sm:$0xff]   ;;  %p1421_p7 = por %p1420_p12, %p1419_p6 }
  0x63   : > { %v1318_v55 = vld [vmem:[#allocation7 + $0x60] sm:$0xff]   ;;  %v1321_v58 = vld [vmem:[#allocation7 + $0x58] sm:$0xff]   ;;  %v1322_v59 = vld [vmem:[#allocation7 + $0x90] sm:$0xff]  }
  0x64   : > { %v279_v30 = vrot.slane %v277_v28, 7  ;;  %v1320_v57 = vld [vmem:[#allocation7 + $0x20] sm:$0xff]   ;;  %v1323_v60 = vld [vmem:[#allocation7 + $0x18] sm:$0xff]   ;;  %v1324_v61 = vld [vmem:[#allocation7 + $0x50] sm:$0xff]   ;;  %p1422_p9 = pnand %p1421_p7, %p1415_p2 }
  0x65   : > { %1114 = vmatpush3.bf16.msra.mxu0 %v1294_v11  ;;  %1176 = vmatpush3.bf16.msra.mxu1 %v1295_v12  ;;  %v1325_v62 = vld [vmem:[#allocation7 + $0x88] sm:$0xff]   ;;  %v1326_v63 = vld [vmem:[#allocation7 + $0x10] sm:$0xff]   ;;  %v1328_v2 = vld [vmem:[#allocation7 + $0x80] sm:$0xff]  }
  0x66   : > { %1115 = vmatprep.subr.bf16.mxu0 %v1296_v13  ;;  %1177 = vmatprep.subr.bf16.mxu1 %v1489_v0  ;;  %v282_v32 = vor.u32 %v280_v29, %v279_v30  ;;  %v289_v33 = vsel %vm1683_vm3, %v279_v30, 0  ;;  %v1327_v1 = vld [vmem:[#allocation7 + $0x48] sm:$0xff]   ;;  %v1330_v4 = vld [vmem:[#allocation7 + $0x40] sm:$0xff]  }
  0x67   : > { %v299_v34 = vshll.u32 %v289_v33, 16  ;;  %v308_v35 = vrot.slane %v289_v33, 1  ;;  %v1329_v3 = vld [vmem:[#allocation7 + $0x8] sm:$0xff]   ;;  %v1331_v5 = vld [vmem:[#allocation7] sm:$0xff]  }
  0x68   : > { %v288_v36 = vsel %vm1683_vm3, 0, %v282_v32  ;;  %v1041_v11 = vld [vmem:[%s1770_s3] ss:$0 sm:$0xff] }
  0x69   : > { %1116 = vmatpush3.bf16.msra.mxu0 %v1297_v14  ;;  %1178 = vmatpush3.bf16.msra.mxu1 %v1298_v15  ;;  %v292_v37 = vshrl.u32 %v288_v36, 16  ;;  %v294_v38 = vshll.u32 %v288_v36, 16  ;;  %v307_v39 = vrot.slane %v288_v36, 1  ;;  %v301_v42 = vrot.slane %v299_v34, 1 }
  0x6a   : > { %1117 = vmatprep.subr.bf16.mxu0 %v1299_v16  ;;  %1179 = vmatprep.subr.bf16.mxu1 %v1489_v0 }
  0x6b   : > { %v296_v41 = vrot.slane %v294_v38, 1  ;;  %v309_v43 = vsel %vm306_vm5, %v307_v39, %v308_v35 }
  0x6d   : > { %1118 = vmatpush3.bf16.msra.mxu0 %v1300_v17  ;;  %1180 = vmatpush3.bf16.msra.mxu1 %v1301_v18  ;;  %v297_v44 = vor.u32 %v296_v41, %v292_v37 }
  0x6e   : > { %1119 = vmatprep.subr.bf16.mxu0 %v1302_v19  ;;  %1181 = vmatprep.subr.bf16.mxu1 %v1489_v0 }
  0x6f   : > { %v302_v45 = vsel %vm290_vm4, %v297_v44, %v301_v42 }
  0x70   : > { %542 = vmatprep.mubr.bf16.mxu0 %v302_v45 }
  0x71   : > { %1120 = vmatpush3.bf16.msra.mxu0 %v1303_v20  ;;  %1182 = vmatpush3.bf16.msra.mxu1 %v1304_v21 }
  0x72   : > { %1121 = vmatprep.subr.bf16.mxu0 %v1305_v22  ;;  %1183 = vmatprep.subr.bf16.mxu1 %v1489_v0 }
  0x75   : > { %1122 = vmatpush3.bf16.msra.mxu0 %v1306_v25  ;;  %1184 = vmatpush3.bf16.msra.mxu1 %v1307_v27 }
  0x76   : > { %1189 = vmatprep.subr.bf16.mxu1 %v1489_v0  ;;  %1138 = vmatprep.subr.bf16.mxu0 %v1309_v46 }
  0x78   : > { %1186 = vmatmul.mubr.bf16.vlgmr.msra.gmra.mxu1 %v309_v43  ;;  %543 = vmatmul.mubr.bf16.vlgmr.msra.gmra.mxu0 %v288_v36 }
  0x79   : > { %1190 = vmatpush3.bf16.msra.mxu1 %v1308_v40  ;;  %1205 = vmatprep.mubr.msk.bf16.mxu1 %vm1490_vm0, %v1489_v0 }
  0x7a   : > { %1191 = vmatprep.subr.bf16.mxu1 %v1489_v0  ;;  %1139 = vmatpush3.bf16.msra.mxu0 %v1311_v48 }
  0x7b   : > { %1140 = vmatprep.subr.bf16.mxu0 %v1312_v49 }
  0x7d   : > { %1192 = vmatpush3.bf16.msra.mxu1 %v1310_v47 }
  0x7e   : > { %1193 = vmatprep.subr.bf16.mxu1 %v1489_v0  ;;  %1141 = vmatpush3.bf16.msra.mxu0 %v1314_v51 }
  0x7f   : > { %1142 = vmatprep.subr.bf16.mxu0 %v1315_v52 }
  0x81   : > { %1194 = vmatpush3.bf16.msra.mxu1 %v1313_v50 }
  0x82   : > { %1195 = vmatprep.subr.bf16.mxu1 %v1489_v0  ;;  %1143 = vmatpush3.bf16.msra.mxu0 %v1317_v54 }
  0x83   : > { %1144 = vmatprep.subr.bf16.mxu0 %v1318_v55 }
  0x85   : > { %1196 = vmatpush3.bf16.msra.mxu1 %v1316_v53  ;;  %v1090_v53 = vld [vmem:[%s1771_s4] ss:$0 sm:$0xff] }
  0x86   : > { %1197 = vmatprep.subr.bf16.mxu1 %v1489_v0  ;;  %1145 = vmatpush3.bf16.msra.mxu0 %v1320_v57 }
  0x87   : > { %1146 = vmatprep.subr.bf16.mxu0 %v1321_v58 }
  0x89   : > { %1198 = vmatpush3.bf16.msra.mxu1 %v1319_v56 }
  0x8a   : > { %1199 = vmatprep.subr.bf16.mxu1 %v1489_v0  ;;  %1147 = vmatpush3.bf16.msra.mxu0 %v1323_v60 }
  0x8b   : > { %1148 = vmatprep.subr.bf16.mxu0 %v1324_v61 }
  0x8d   : > { %1200 = vmatpush3.bf16.msra.mxu1 %v1322_v59 }
  0x8e   : > { %1201 = vmatprep.subr.bf16.mxu1 %v1489_v0  ;;  %1149 = vmatpush3.bf16.msra.mxu0 %v1326_v63 }
  0x8f   : > { %1150 = vmatprep.subr.bf16.mxu0 %v1327_v1 }
  0x91   : > { %1202 = vmatpush3.bf16.msra.mxu1 %v1325_v62 }
  0x92   : > { %1203 = vmatprep.subr.bf16.mxu1 %v1489_v0  ;;  %1151 = vmatpush3.bf16.msra.mxu0 %v1329_v3 }
  0x93   : > { %1152 = vmatprep.subr.bf16.mxu0 %v1330_v4 }
  0x95   : > { %1204 = vmatpush3.bf16.msra.mxu1 %v1328_v2 }
  0x96   : > { %1153 = vmatpush3.bf16.msra.mxu0 %v1331_v5 }
 0x138   : > { %v585_v6 = vpop.f32.mrf.mxu1  ;;  %v1123_v9 = vpop.f32.mrf.mxu0 }
 0x13a   : > { %v1187_v7 = vpop.f32.mrf.mxu1  ;;  %v1124_v0 = vpop.f32.mrf.mxu0 }
 0x13b   : > { %v1125_v12 = vadd.f32 %v1124_v0, %v1123_v9 }
 0x13c   : > { %v588_v8 = vpop.f32.mrf.mxu1  ;;  %v1126_v13 = vpop.f32.mrf.mxu0 }
 0x13d   : > { %v545_v14 = vadd.f32 %v1125_v12, %v1041_v11 }
 0x13e   : > { %v1188_v10 = vpop.f32.mrf.mxu1  ;;  %v1127_v15 = vpop.f32.mrf.mxu0 }
 0x13f   : > { %v1128_v16 = vadd.f32 %v1127_v15, %v1126_v13  ;;  %v586_v17 = vadd.f32 %v585_v6, %v545_v14 }
 0x141   : > { %v548_v18 = vadd.f32 %v1128_v16, %v1041_v11  ;;  %v592_v20 = vmax.f32 %v586_v17, 0.0 }
 0x143   : > { %v589_v19 = vadd.f32 %v588_v8, %v548_v18 }
 0x145   : > { %v593_v21 = vmax.f32 %v589_v19, 0.0 }
 0x147   : > { %v594_v22 = vpack.c.bf16 %v593_v21, %v592_v20 }
 0x149   : > { %v596_v25 = vshrl.u32 %v594_v22, 16  ;;  %v599_v27 = vshll.u32 %v594_v22, 16 }
 0x14b   : > { %v598_v26 = vrot.slane %v596_v25, 7 }
 0x14d   : > { %v601_v28 = vor.u32 %v599_v27, %v598_v26  ;;  %v605_v29 = vsel %vm1683_vm3, %v598_v26, 0 }
 0x14e   : > { %v622_v33 = vrot.slane %v605_v29, 1  ;;  %v614_v35 = vshll.u32 %v605_v29, 16 }
 0x14f   : > { %v604_v30 = vsel %vm1683_vm3, 0, %v601_v28 }
 0x150   : > { %v621_v32 = vrot.slane %v604_v30, 1  ;;  %v609_v34 = vshll.u32 %v604_v30, 16  ;;  %v607_v37 = vshrl.u32 %v604_v30, 16  ;;  %v616_v40 = vrot.slane %v614_v35, 1 }
 0x152   : > { %v623_v36 = vsel %vm306_vm5, %v621_v32, %v622_v33  ;;  %v611_v38 = vrot.slane %v609_v34, 1 }
 0x153   : > { %1206 = vmatmul.mubr.bf16.vlgmr.msra.gmra.mxu1 %v623_v36 }
 0x154   : > { %v612_v39 = vor.u32 %v611_v38, %v607_v37 }
 0x156   : > { %v617_v41 = vsel %vm290_vm4, %v612_v39, %v616_v40 }
 0x157   : > { %849 = vmatprep.mubr.bf16.mxu0 %v617_v41 }
 0x158   : > { %850 = vmatmul.mubr.bf16.vlgmr.msra.gmra.mxu0 %v604_v30 }
 0x213   : > { %v892_v42 = vpop.f32.mrf.mxu1 }
 0x215   : > { %v1207_v43 = vpop.f32.mrf.mxu1 }
 0x217   : > { %v895_v31 = vpop.f32.mrf.mxu1 }
 0x218   : > { %v1154_v44 = vpop.f32.mrf.mxu0 }
 0x219   : > { %v1208_v45 = vpop.f32.mrf.mxu1 }
 0x21a   : > { %v1155_v46 = vpop.f32.mrf.mxu0 }
 0x21b   : > { %v1156_v47 = vadd.f32 %v1155_v46, %v1154_v44 }
 0x21c   : > { %v1157_v48 = vpop.f32.mrf.mxu0 }
 0x21d   : > { %v893_v49 = vadd.f32 %v1156_v47, %v892_v42 }
 0x21e   : > { %v1158_v50 = vpop.f32.mrf.mxu0 }
 0x21f   : > { %v899_v51 = vadd.f32 %v893_v49, %v1674_v23  ;;  %v1159_v52 = vadd.f32 %v1158_v50, %v1157_v48 }
 0x221   : > { %v896_v54 = vadd.f32 %v1159_v52, %v895_v31  ;;  %v908_v55 = vadd.f32 %v1090_v53, %v899_v51 }
 0x223   : > { %v900_v56 = vadd.f32 %v896_v54, %v1677_v24  ;;  %v910_v58 = vmax.f32 %v908_v55, 0.0 }
 0x225   : > { %v909_v57 = vadd.f32 %v1090_v53, %v900_v56 }
 0x227   : > { %v911_v59 = vmax.f32 %v909_v57, 0.0 }
 0x229   : > { %v1105_v23 = vpack.c.bf16 %v911_v59, %v910_v58 }
 0x22b   : > { %1106 = vst [vmem:[%s271_s28] sm:$0xff] %v1105_v23  }
 0x22c   : > { %1425 = shalt.err (!%p1422_p9)
}
 0x22d   : > { %s1426_s24 = scalar_lea.hbm %s1722_s13, 128  ;;  %s1430_s10 = scalar_lea.hbm %s1772_s5, 256 }
 0x22e   : > { %p1427_p13 = scmp.ne.s32.totalorder %s1722_s13, %s1426_s24  ;;  %p1431_p4 = scmp.lt.s32.totalorder %s1722_s13, %s1772_s5 }
 0x22f   : > { %p1432_p8 = scmp.lt.s32.totalorder %s1430_s10, %s1426_s24 }
 0x230   : > { %p1428_p5 = pnand %p1427_p13, %p1790_p10 }
 0x231   : > { %p1433_p3 = por %p1432_p8, %p1431_p4 }
 0x232   : > { %p1429_p0 = pneg %p1428_p5 }
 0x234   : > { %p1434_p11 = pnand %p1433_p3, %p1429_p0 }
 0x236   : > { %1437 = shalt.err (!%p1434_p11)
}
 0x237   : > { %s1492_s28 = smov 64   ;;  %s1493_s7 = smov 4  }
 0x238   : > { %1219 = dma.vmem_to_hbm [thread:$0]  (%p1790_p10), %s1724_s6, 128, %s1722_s13, %s923_s14, %s1492_s28, %s1492_s28, %s1493_s7  }
 0x239 PF: > { %s951_s9 = sand.u32 1, %s1468_s18   ;;  %p1791_p1 = scmp.ne.s32.totalorder %s1778_s25, 0 }
 0x23a   : > { %p1792_p2 = scmp.ge.s32.totalorder %s1480_s21, 2  ;;  %s952_s17 = scalar_lea.sflag [#allocation4], %s951_s9 }
 0x23c   : > { %p1233_p6 = pnand %p1792_p2, %p1791_p1 }
 0x23e   : > { %p1234_p12 = pneg %p1233_p6 }
 0x240   : > { %1463 = dma.done.wait (%p1234_p12), %s952_s17, 128  }
 0x241   : > { %1465 = vsyncadd (%p1234_p12), %s952_s17, 4294967168  ;;  %p19_p7 = scmp.ge.s32.totalorder %s1596_s15, 4   ;;  %s1793_s18 = smov %s1472_s19 }
 0x242   : > { %s1794_s19 = smov %s1476_s20  ;;  %s1795_s20 = smov %s1612_s27 }
 0x243   : > { %s1796_s21 = smov %s1596_s15  ;;  %21 = sbr.rel (!%p19_p7) target bundleno = 6 (0x6), region = 93 }
 0x248   :  { %957 = vsyncpa [#allocation3], 1 }
 0x249   :  { %959 = vsyncpa [#allocation3 + $0x1], 1 }
 0x24a   :  { %960 = vsyncpa [#allocation6], 1 }
 0x24b   :  { %961 = vsyncpa [#allocation4], 1 }
 0x24c   :  { %963 = vsyncpa [#allocation4 + $0x1], 1 }

</bundles_post_ra>
